<compile_context>
chip_gen: v7x
topology: tpu7x:2x2x1
jax: 0.10.0
libtpu: 0.0.40
codegen_flags: <defaults>
</compile_context>

<pallas_src>
import functools
import math

import jax
import jax.numpy as jnp
from jax.experimental import pallas as pl
from jax.experimental.pallas import tpu as pltpu


def notears_sobolev_kernel(xt_ref, w_ref, out_ref, l2_ref, *, k, n_total):
    """One batch tile (batch on the lane axis).

    xt_ref : [D, TN]      x^T tile
    w_ref  : [k, D, D]    folded weight, (kk, out, in), resident
    out_ref: [D, TN]      out^T tile (lane-dense, no padding)
    l2_ref : [1, 1, 1]    per-tile partial of sum(out**2) / n_total
    """
    xt = xt_ref[...].astype(jnp.float32)                    # [D, TN]

    # psi_kk = mu_kk * sin((2kk+1)*theta),  theta = x*pi/2,
    # mu_kk = 2/((2kk+1)*pi)  =>  x / mu_kk = (2kk+1)*theta.
    theta = xt * (0.5 * math.pi)
    s1 = jnp.sin(theta)                                     # the ONLY EUP op
    c2 = 2.0 - 4.0 * (s1 * s1)                              # == 2*cos(2*theta), VPU only

    mus = [2.0 / ((2 * kk + 1) * math.pi) for kk in range(k)]

    # acc[i, n] = sum_kk sum_j W[kk, i, j] * psi_kk[j, n]
    # Per-kk MXU accumulate; w_ref[kk] is a static ref slice (free).  The sin
    # recurrence  sin((2m+1)t) = 2cos(2t)*sin((2m-1)t) - sin((2m-3)t)  builds
    # the next harmonic on the VPU while the MXU digests the previous one.
    acc = jnp.dot(w_ref[0], mus[0] * s1,
                  preferred_element_type=jnp.float32)       # [D, TN]
    s_prev2 = -s1            # sin(-theta)
    s_prev1 = s1             # sin(theta)
    for kk in range(1, k):                                  # static, unrolled
        s_new = c2 * s_prev1 - s_prev2
        acc = acc + jnp.dot(w_ref[kk], mus[kk] * s_new,
                            preferred_element_type=jnp.float32)
        s_prev2, s_prev1 = s_prev1, s_new

    out_ref[...] = acc.astype(out_ref.dtype)

    # Per-tile partial l2: cross-lane reduce (XLU) then sublane reduce; divide
    # by the GLOBAL batch size (padded batch columns are all-zero -> contribute 0).
    col_sq = jnp.sum(acc * acc, axis=-1, keepdims=True)     # [D, 1]
    l2_ref[...] = jnp.reshape(jnp.sum(col_sq) * (1.0 / n_total), (1, 1, 1))


def notears_sobolev_forward(x, w_pos, w_neg, k, *, tile_n=None):
    """x: [N, D]; w_pos, w_neg: [D, D*k] (torch Linear weight layout).

    Returns (out [N, D], l2_reg scalar), matching NotearsSobolev.forward /
    l2_reg_store.
    """
    n, d = x.shape

    # --- Weight glue (wrapper-side, free): fold pos/neg and reorder torch's
    # interleaved column order (j*k + kk) into [k, d_out, d_in].
    w3 = jnp.transpose((w_pos - w_neg).reshape(d, d, k), (2, 0, 1))

    # --- Batch-on-lanes: present x transposed so the batch is the lane axis.
    xt = jnp.transpose(x)                                    # [D, N]

    # --- Batch tile: ~2 MiB f32 x-tile budget; lane axis multiple of 128.
    if tile_n is None:
        tile_n = min(8192, max(128, (2 * 1024 * 1024) // (4 * d)))
        # v7x has 2 TensorCores: prefer >= 2 grid steps when the batch allows
        # so dimension_semantics=("parallel",) can shard them.
        if n > 256:
            half = -(-n // 2)
            tile_n = min(tile_n, -(-half // 128) * 128)
    tn = max(128, (tile_n // 128) * 128)
    n_pad = -(-n // tn) * tn
    if n_pad != n:
        # zero-pad the batch: sin(0)=0 -> padded columns contribute nothing.
        xt = jnp.pad(xt, ((0, 0), (0, n_pad - n)))
    num_tiles = n_pad // tn

    cost = pl.CostEstimate(
        flops=2 * n_pad * d * d * k + 8 * n_pad * d * k,
        transcendentals=n_pad * d,
        bytes_accessed=4 * (2 * n_pad * d + k * d * d + num_tiles),
    )

    out_t, l2_parts = pl.pallas_call(
        functools.partial(notears_sobolev_kernel, k=k, n_total=n),
        grid=(num_tiles,),
        out_shape=(
            jax.ShapeDtypeStruct((d, n_pad), x.dtype),
            jax.ShapeDtypeStruct((num_tiles, 1, 1), jnp.float32),
        ),
        in_specs=[
            pl.BlockSpec((d, tn), lambda i: (0, i)),        # x^T tile (batch on lanes)
            pl.BlockSpec((k, d, d), lambda i: (0, 0, 0)),   # folded weight, resident
        ],
        out_specs=(
            pl.BlockSpec((d, tn), lambda i: (0, i)),        # out^T tile, no padding
            pl.BlockSpec((1, 1, 1), lambda i: (i, 0, 0)),   # per-tile l2 partial
        ),
        compiler_params=pltpu.CompilerParams(
            dimension_semantics=("parallel",),               # shard grid over v7x's 2 TCs
        ),
        cost_estimate=cost,
    )(xt, w3)

    out = jnp.transpose(out_t[:, :n])    # strip batch padding, back to [N, D]
    l2 = jnp.sum(l2_parts)               # partials already divided by global n
    return out, l2


def reference_forward(x, w_pos, w_neg, k):
    """Pure-JAX reference mirroring the PyTorch module exactly."""
    n, d = x.shape
    seq = []
    for kk in range(k):
        mu = 2.0 / (2 * kk + 1) / math.pi
        seq.append(mu * jnp.sin(x / mu))
    bases = jnp.stack(seq, axis=2).reshape(n, d * k)         # interleaved ordering
    out = bases @ w_pos.T - bases @ w_neg.T
    l2 = jnp.sum(out ** 2) / n
    return out, l2


if __name__ == "__main__":
    d, k, n = 8, 4, 300

    key = jax.random.PRNGKey(0)
    kx, kp, kn = jax.random.split(key, 3)

    x = jax.random.normal(kx, (n, d), dtype=jnp.float32)

    # NOTE: the module's __init__ zero-inits fc1_pos / fc1_neg weights (which
    # would make the forward trivially zero).  We use deterministic small
    # non-negative values of the correct shape [d, d*k] so the kernel compute
    # path is exercised; forward semantics are identical.
    w_pos = jnp.abs(jax.random.normal(kp, (d, d * k), dtype=jnp.float32)) * 0.1
    w_neg = jnp.abs(jax.random.normal(kn, (d, d * k), dtype=jnp.float32)) * 0.1

    # Default tiling -> tn=256, n_pad=512, 2 grid steps: exercises the batch
    # grid, zero padding and per-tile l2 partial accumulation.
    out, l2 = notears_sobolev_forward(x, w_pos, w_neg, k)
    out = jax.block_until_ready(out)
    l2 = jax.block_until_ready(l2)

    out_ref, l2_ref = reference_forward(x, w_pos, w_neg, k)
    assert out.shape == (n, d)
    assert jnp.allclose(out, out_ref, atol=1e-4, rtol=1e-4), \
        float(jnp.max(jnp.abs(out - out_ref)))
    assert jnp.allclose(l2, l2_ref, atol=1e-4, rtol=1e-4), \
        (float(l2), float(l2_ref))

    print("KERNEL_OK")
</pallas_src>

<mosaic_0001>
module attributes {stable_mosaic.version = 11 : i64} {
  func.func @notears_sobolev_kernel(%arg0: i32, %arg1: memref<8x256xf32, #tpu.memory_space<vmem>>, %arg2: memref<4x8x8xf32, #tpu.memory_space<vmem>>, %arg3: memref<8x256xf32, #tpu.memory_space<vmem>>, %arg4: memref<1x1x1xf32, #tpu.memory_space<vmem>>) attributes {dimension_semantics = [#tpu.dimension_semantics<parallel>], iteration_bounds = array<i64: 2>, scalar_prefetch = 0 : i64, scratch_operands = 0 : i64, tpu.core_type = #tpu.core_type<tc>, window_params = [{transform_indices = @transform_0, window_bounds = array<i64: 8, 256>}, {pipeline_mode = #tpu.pipeline_mode<synchronous>, transform_indices = @transform_1, window_bounds = array<i64: 4, 8, 8>}, {transform_indices = @transform_2, window_bounds = array<i64: 8, 256>}, {transform_indices = @transform_3, window_bounds = array<i64: 1, 1, 1>}]} {
    %c0 = arith.constant 0 : index
    %c0_0 = arith.constant 0 : index
    %0 = vector.load %arg1[%c0, %c0_0] : memref<8x256xf32, #tpu.memory_space<vmem>>, vector<8x256xf32>
    %cst = arith.constant 1.57079637 : f32
    %1 = vector.broadcast %cst : f32 to vector<8x256xf32>
    %2 = arith.mulf %0, %1 : vector<8x256xf32>
    %3 = math.sin %2 : vector<8x256xf32>
    %4 = arith.mulf %3, %3 : vector<8x256xf32>
    %cst_1 = arith.constant 4.000000e+00 : f32
    %5 = vector.broadcast %cst_1 : f32 to vector<8x256xf32>
    %6 = arith.mulf %5, %4 : vector<8x256xf32>
    %cst_2 = arith.constant 2.000000e+00 : f32
    %7 = vector.broadcast %cst_2 : f32 to vector<8x256xf32>
    %8 = arith.subf %7, %6 : vector<8x256xf32>
    %c0_3 = arith.constant 0 : index
    %c0_4 = arith.constant 0 : index
    %c0_5 = arith.constant 0 : index
    %9 = vector.load %arg2[%c0_3, %c0_4, %c0_5] : memref<4x8x8xf32, #tpu.memory_space<vmem>>, vector<1x8x8xf32>
    %10 = vector.shape_cast %9 : vector<1x8x8xf32> to vector<8x8xf32>
    %cst_6 = arith.constant 0.636619746 : f32
    %11 = vector.broadcast %cst_6 : f32 to vector<8x256xf32>
    %12 = arith.mulf %11, %3 : vector<8x256xf32>
    %cst_7 = arith.constant dense<0.000000e+00> : vector<8x256xf32>
    %13 = tpu.matmul %10, %12, %cst_7 {dimension_numbers = #tpu.dot_dimension_numbers<[1], [0], [0], [1], [0, 0, 1, 1], [], []>} : vector<8x8xf32>, vector<8x256xf32>, vector<8x256xf32> -> vector<8x256xf32>
    %cst_8 = arith.constant 0.000000e+00 : f32
    %14 = vector.broadcast %cst_8 : f32 to vector<8x256xf32>
    %15 = arith.subf %14, %3 : vector<8x256xf32>
    %16 = arith.mulf %8, %3 : vector<8x256xf32>
    %17 = arith.subf %16, %15 : vector<8x256xf32>
    %c1 = arith.constant 1 : index
    %c0_9 = arith.constant 0 : index
    %c0_10 = arith.constant 0 : index
    %18 = vector.load %arg2[%c1, %c0_9, %c0_10] : memref<4x8x8xf32, #tpu.memory_space<vmem>>, vector<1x8x8xf32>
    %19 = vector.shape_cast %18 : vector<1x8x8xf32> to vector<8x8xf32>
    %cst_11 = arith.constant 0.212206587 : f32
    %20 = vector.broadcast %cst_11 : f32 to vector<8x256xf32>
    %21 = arith.mulf %20, %17 : vector<8x256xf32>
    %cst_12 = arith.constant dense<0.000000e+00> : vector<8x256xf32>
    %22 = tpu.matmul %19, %21, %cst_12 {dimension_numbers = #tpu.dot_dimension_numbers<[1], [0], [0], [1], [0, 0, 1, 1], [], []>} : vector<8x8xf32>, vector<8x256xf32>, vector<8x256xf32> -> vector<8x256xf32>
    %23 = arith.addf %13, %22 : vector<8x256xf32>
    %24 = arith.mulf %8, %17 : vector<8x256xf32>
    %25 = arith.subf %24, %3 : vector<8x256xf32>
    %c2 = arith.constant 2 : index
    %c0_13 = arith.constant 0 : index
    %c0_14 = arith.constant 0 : index
    %26 = vector.load %arg2[%c2, %c0_13, %c0_14] : memref<4x8x8xf32, #tpu.memory_space<vmem>>, vector<1x8x8xf32>
    %27 = vector.shape_cast %26 : vector<1x8x8xf32> to vector<8x8xf32>
    %cst_15 = arith.constant 0.127323955 : f32
    %28 = vector.broadcast %cst_15 : f32 to vector<8x256xf32>
    %29 = arith.mulf %28, %25 : vector<8x256xf32>
    %cst_16 = arith.constant dense<0.000000e+00> : vector<8x256xf32>
    %30 = tpu.matmul %27, %29, %cst_16 {dimension_numbers = #tpu.dot_dimension_numbers<[1], [0], [0], [1], [0, 0, 1, 1], [], []>} : vector<8x8xf32>, vector<8x256xf32>, vector<8x256xf32> -> vector<8x256xf32>
    %31 = arith.addf %23, %30 : vector<8x256xf32>
    %32 = arith.mulf %8, %25 : vector<8x256xf32>
    %33 = arith.subf %32, %17 : vector<8x256xf32>
    %c3 = arith.constant 3 : index
    %c0_17 = arith.constant 0 : index
    %c0_18 = arith.constant 0 : index
    %34 = vector.load %arg2[%c3, %c0_17, %c0_18] : memref<4x8x8xf32, #tpu.memory_space<vmem>>, vector<1x8x8xf32>
    %35 = vector.shape_cast %34 : vector<1x8x8xf32> to vector<8x8xf32>
    %cst_19 = arith.constant 0.0909456834 : f32
    %36 = vector.broadcast %cst_19 : f32 to vector<8x256xf32>
    %37 = arith.mulf %36, %33 : vector<8x256xf32>
    %cst_20 = arith.constant dense<0.000000e+00> : vector<8x256xf32>
    %38 = tpu.matmul %35, %37, %cst_20 {dimension_numbers = #tpu.dot_dimension_numbers<[1], [0], [0], [1], [0, 0, 1, 1], [], []>} : vector<8x8xf32>, vector<8x256xf32>, vector<8x256xf32> -> vector<8x256xf32>
    %39 = arith.addf %31, %38 : vector<8x256xf32>
    %c0_21 = arith.constant 0 : index
    %c0_22 = arith.constant 0 : index
    %40 = vector.load %arg3[%c0_21, %c0_22] : memref<8x256xf32, #tpu.memory_space<vmem>>, vector<8x256xf32>
    tpu.vector_store %arg3[%c0_21, %c0_22], %39 {strides = array<i32>} : memref<8x256xf32, #tpu.memory_space<vmem>>, vector<8x256xf32>,
    %41 = arith.mulf %39, %39 : vector<8x256xf32>
    %cst_23 = arith.constant dense<0.000000e+00> : vector<8xf32>
    %42 = vector.multi_reduction <add>, %41, %cst_23 [1] : vector<8x256xf32> to vector<8xf32>
    %43 = vector.shape_cast %42 : vector<8xf32> to vector<8x1xf32>
    %44 = vector.shape_cast %43 : vector<8x1xf32> to vector<1x8x1xf32>
    %cst_24 = arith.constant dense<0.000000e+00> : vector<1xf32>
    %45 = vector.multi_reduction <add>, %44, %cst_24 [1, 2] : vector<1x8x1xf32> to vector<1xf32>
    %46 = vector.shape_cast %45 : vector<1xf32> to vector<1x1x1xf32>
    %47 = vector.extract %46[0, 0, 0] : f32 from vector<1x1x1xf32>
    %cst_25 = arith.constant 0.00333333341 : f32
    %48 = arith.mulf %47, %cst_25 : f32
    %49 = vector.broadcast %48 : f32 to vector<1x1x1xf32>
    %c0_26 = arith.constant 0 : index
    %c0_27 = arith.constant 0 : index
    %c0_28 = arith.constant 0 : index
    %50 = vector.load %arg4[%c0_26, %c0_27, %c0_28] : memref<1x1x1xf32, #tpu.memory_space<vmem>>, vector<1x1x1xf32>
    tpu.vector_store %arg4[%c0_26, %c0_27, %c0_28], %49 {strides = array<i32>} : memref<1x1x1xf32, #tpu.memory_space<vmem>>, vector<1x1x1xf32>,
    return
  }
  func.func @transform_0(%arg0: i32) -> (i32, i32) {
    %c0_i32 = arith.constant 0 : i32
    %c0_i32_0 = arith.constant 0 : i32
    return %c0_i32, %arg0 : i32, i32
  }
  func.func @transform_1(%arg0: i32) -> (i32, i32, i32) {
    %c0_i32 = arith.constant 0 : i32
    %c0_i32_0 = arith.constant 0 : i32
    %c0_i32_1 = arith.constant 0 : i32
    %c0_i32_2 = arith.constant 0 : i32
    return %c0_i32, %c0_i32_0, %c0_i32_1 : i32, i32, i32
  }
  func.func @transform_2(%arg0: i32) -> (i32, i32) {
    %c0_i32 = arith.constant 0 : i32
    %c0_i32_0 = arith.constant 0 : i32
    return %c0_i32, %arg0 : i32, i32
  }
  func.func @transform_3(%arg0: i32) -> (i32, i32, i32) {
    %c0_i32 = arith.constant 0 : i32
    %c0_i32_0 = arith.constant 0 : i32
    %c0_i32_1 = arith.constant 0 : i32
    return %arg0, %c0_i32, %c0_i32_0 : i32, i32, i32
  }
}

</mosaic_0001>

<bundles_post_ra>
// kernel: tpu_custom_call.1
= control target key start
LH: loop header
LB: loop body
LE: loop exit
PB: predicated region body
PF: predicated region fallthrough
CT: control target
= control target key end

     0   :  { %9 = vsyncpa [#allocation3], 0  ;;  %s1462_s0 = inlined_call_operand.hbm [shape: f32[8,512], index: 0, kind: input, shape index: {}]   ;;  %s1463_s1 = inlined_call_operand.hbm [shape: f32[4,8,8], index: 1, kind: input, shape index: {}]   ;;  %s1464_s2 = inlined_call_operand.hbm [shape: f32[8,512], index: 2, kind: output, shape index: {0}]   ;;  %s1465_s3 = inlined_call_operand.vmem [shape: f32[2,1,1], index: 3, kind: output, shape index: {1}]  }
   0x1   :  { %11 = vsyncpa [#allocation3 + $0x1], 0 }
   0x2   :  { %12 = vsyncpa [#allocation6], 0 }
   0x3   :  { %13 = vsyncpa [#allocation4], 0 }
   0x4   :  { %15 = vsyncpa [#allocation4 + $0x1], 0  ;;  %s1185_s12 = smov 0   ;;  %s1187_s13 = smov 0  }
   0x5   :  { %s1189_s14 = smov 0   ;;  %s1191_s15 = smov 0  }
   0x6 LB: > { %s1206_s16 = sadd.s32 4294967295, %s1151_s15   ;;  %s903_s17 = sadd.s32 4294967294, %s1151_s15   ;;  %s1151_s15 = sphi %s1191_s15, %s1485_s15   ;;  %s1147_s14 = sphi %s1189_s14, %s1484_s14   ;;  %s1143_s13 = sphi %s1187_s13, %s1483_s13   ;;  %s1139_s12 = sphi %s1185_s12, %s1482_s12  }
   0x7   : > { %p41_p0 = scmp.ne.s32.totalorder %s1143_s13, %s1139_s12  ;;  %p1466_p1 = scmp.eq.s32.totalorder %s1206_s16, 0 }
   0x8   : > { %p92_p3 = scmp.eq.s32.totalorder %s903_s17, 1  ;;  %p904_p5 = scmp.ge.s32.totalorder %s1151_s15, 1 }
   0x9   : > { %p1215_p4 = por %p1466_p1, %p41_p0  ;;  %p125_p7 = scmp.lt.s32.totalorder %s1151_s15, 3 }
   0xa   : > { %p1220_p6 = por %p92_p3, %p41_p0  ;;  %s1153_s21 = smov [#allocation5]  }
   0xb   : > { %s1469_s18 = scalar_select %p1215_p4, 1, 0 }
   0xc   : > { %s1470_s19 = scalar_select %p1220_p6, 1, 0 }
   0xd   : > { %p1225_p8 = pnand %p904_p5, %p125_p7  ;;  %s137_s22 = sshll.u32 %s1153_s21, 4  ;;  %s1229_s22 = int_to_ptr.vmem [resolvable:$true] %s137_s22 }
   0xe   : > { %s1241_s24 = sadd.s32 1, %s1151_s15   ;;  %s28_s25 = sadd.s32 1, %s1147_s14 }
   0xf   : > { %s1471_s20 = scalar_select %p1225_p8, 1, 0 }
  0x10   : > { %p957_p9 = pneg %p1225_p8  ;;  %s25_s26 = ssub.s32 %s1151_s15, %s1241_s24 }
  0x11   : > { %s1023_s29 = scalar_lea.hbm %s1463_s1, 512 }
  0x12   : > { %p1236_p11 = pnand %p957_p9, %p1466_p1  ;;  %p1024_p12 = scmp.ne.s32.totalorder %s1463_s1, %s1023_s29 }
  0x13   : > { %p1030_p5 = scmp.lt.u32.totalorder %s1023_s29, %s1463_s1 }
  0x14   : > { %p1025_p13 = pneg %p1236_p11 }
  0x16   : > { %p1026_p0 = pnand %p1025_p13, %p1024_p12 }
  0x18   : > { %p1027_p3 = pneg %p1026_p0 }
  0x1a   : > { %p1032_p7 = pnand %p1030_p5, %p1027_p3 }
  0x1c   : > { %1035 = shalt.err (!%p1032_p7)
}
  0x1d   : > { %s1036_s7 = scalar_lea.vmem %s1229_s22, 512  ;;  %p1044_p2 = scmp.lt.s32.totalorder %s1229_s22, %s1229_s22 }
  0x1e   : > { %p1037_p9 = scmp.ne.s32.totalorder %s1229_s22, %s1036_s7  ;;  %p1045_p6 = scmp.lt.s32.totalorder %s1036_s7, %s1036_s7 }
  0x20   : > { %p1039_p10 = pnand %p1037_p9, %p1025_p13  ;;  %p1046_p4 = por %p1045_p6, %p1044_p2 }
  0x22   : > { %p1040_p1 = pneg %p1039_p10 }
  0x24   : > { %p1047_p8 = pnand %p1046_p4, %p1040_p1 }
  0x26   : > { %1050 = shalt.err (!%p1047_p8)
}
  0x27   : > { %s1154_s8 = smov 128   ;;  %s1155_s9 = smov 8  }
  0x28   : > { %960 = dma.hbm_to_vmem [thread:$0]  (!%p1236_p11), %s1463_s1, 512, %s1229_s22, [#allocation6], %s1154_s8, %s1154_s8, %s1155_s9  }
  0x29   : > { %p26_p2 = scmp.eq.s32.totalorder %s25_s26, 0  ;;  %p35_p1 = scmp.ne.s32.totalorder %s1147_s14, %s1143_s13 }
  0x2a   : > { %p36_p4 = scmp.eq.s32.totalorder %s1151_s15, 0  ;;  %p970_p6 = scmp.lt.s32.totalorder %s1151_s15, 2 }
  0x2b   : > { %s1272_s17 = scalar_select %p26_p2, %s1147_s14, %s28_s25  }
  0x2c   : > { %p37_p8 = por %p36_p4, %p35_p1  ;;  %p1473_p10 = scmp.eq.s32.totalorder %s1206_s16, 1 }
  0x2d   : > { %s151_s27 = sand.u32 1, %s1147_s14   ;;  %s931_s28 = sshll.u32 %s1151_s15, 8 }
  0x2e   : > { %p1276_p12 = por %p1473_p10, %p35_p1  ;;  %s907_s29 = sshll.u32 %s151_s27, 4 }
  0x2f   : > { %s1285_s4 = scalar_lea.hbm %s1462_s0, %s931_s28  ;;  %s155_s22 = scalar_lea.vmem [#allocation2], %s907_s29 }
  0x30   : > { %s163_s25 = sshll.u32 %s155_s22, 4  ;;  %p1287_p11 = pnand %p970_p6, %p37_p8  ;;  %s1291_s25 = int_to_ptr.vmem [resolvable:$true] %s163_s25 }
  0x31   : > { %s152_s5 = scalar_lea.sflag [#allocation3], %s151_s27  ;;  %s1051_s6 = scalar_lea.hbm %s1285_s4, 256 }
  0x32   : > { %p1052_p13 = scmp.ne.s32.totalorder %s1285_s4, %s1051_s6  ;;  %p1053_p0 = pneg %p1287_p11 }
  0x33   : > { %s1056_s9 = scalar_lea.hbm %s1462_s0, 512  ;;  %p1057_p7 = scmp.lt.u32.totalorder %s1285_s4, %s1462_s0 }
  0x34   : > { %p1054_p3 = pnand %p1053_p0, %p1052_p13  ;;  %p1058_p9 = scmp.lt.u32.totalorder %s1056_s9, %s1051_s6 }
  0x35   : > { %p1060_p1 = scmp.lt.u32.totalorder %s1051_s6, %s1285_s4 }
  0x36   : > { %p1055_p5 = pneg %p1054_p3  ;;  %p1059_p2 = por %p1058_p9, %p1057_p7 }
  0x38   : > { %p1061_p4 = por %p1060_p1, %p1059_p2 }
  0x3a   : > { %p1062_p6 = pnand %p1061_p4, %p1055_p5 }
  0x3c   : > { %1065 = shalt.err (!%p1062_p6)
}
  0x3d   : > { %s1066_s27 = scalar_lea.vmem %s1291_s25, 256  ;;  %s1156_s28 = smov [#allocation2]  }
  0x3e   : > { %p1067_p8 = scmp.ne.s32.totalorder %s1291_s25, %s1066_s27  ;;  %s1071_s29 = sshll.u32 %s1156_s28, 4  ;;  %s1072_s29 = int_to_ptr.vmem [resolvable:$false] %s1071_s29 }
  0x3f   : > { %s1073_s23 = scalar_lea.vmem %s1072_s29, 512  ;;  %p1074_p3 = scmp.lt.s32.totalorder %s1291_s25, %s1072_s29 }
  0x40   : > { %p1069_p10 = pnand %p1067_p8, %p1053_p0  ;;  %p1075_p7 = scmp.lt.s32.totalorder %s1073_s23, %s1066_s27 }
  0x42   : > { %p1070_p13 = pneg %p1069_p10  ;;  %p1076_p9 = por %p1075_p7, %p1074_p3 }
  0x44   : > { %p1077_p2 = pnand %p1076_p9, %p1070_p13 }
  0x46   : > { %1080 = shalt.err (!%p1077_p2)
}
  0x47   : > { %964 = dma.hbm_to_vmem [thread:$0]  (!%p1287_p11), %s1285_s4, 256, %s1291_s25, %s152_s5  }
  0x48   : > { %p1476_p5 = scmp.ne.s32.totalorder %s1471_s20, 0 }
  0x49   : > { %s1321_s30 = sand.u32 (!%p1476_p5), 1, %s1143_s13   ;;  %p1477_p0 = scmp.ne.s32.totalorder (!%p1476_p5), %s1469_s18, 0 }
  0x4a   : > { %172 = sbr.rel (%p1476_p5) target bundleno = 772 (0x304), region = 28  ;;  %s911_s22 = sshll.u32 (!%p1476_p5), %s1321_s30, 4 }
  0x4b   : > { %s175_s6 = scalar_lea.sflag (!%p1476_p5), [#allocation3], %s1321_s30  ;;  %s178_s7 = scalar_lea.vmem (!%p1476_p5), [#allocation2], %s911_s22 }
  0x51   : > { %1126 = dma.done.wait (%p1477_p0), %s175_s6, 256  }
  0x52   : > { %1128 = vsyncadd (%p1477_p0), %s175_s6, 4294967040  ;;  %p1478_p11 = scmp.eq.s32.totalorder %s1206_s16, 0 }
  0x54   : > { %1130 = dma.done.wait (%p1478_p11), [#allocation6], 512   ;;  %p1479_p1 = pmov %p1478_p11 }
  0x55   : > { %v1157_v0 = vmov 0.0   ;;  %v214_v1 = vld [vmem:[%s178_s7 + $0x8] sm:$0xff]  ;;  %v213_v2 = vld [vmem:[%s178_s7] sm:$0xff]  ;;  %v1158_v27 = vmov 683565275   ;;  %s202_s18 = scalar_lea.vmem [#allocation7], %s911_s22 }
  0x56   : > { %1132 = vsyncadd (%p1479_p1), [#allocation6], 4294966784  ;;  %512 = vmatprep.mubr.f32.mxu1 %v1157_v0  ;;  %668 = vmatprep.mubr.f32.mxu0 %v1157_v0  ;;  %v1337_v3 = vmul.f32 1.5707964, %v214_v1  ;;  %v1339_v4 = vmul.f32 1.5707964, %v213_v2 }
  0x57   : > { %v1159_v29 = vmov 2475754826   ;;  %v1160_v31 = vmov 2131351028   ;;  %v1161_v33 = vmov 2102212464  }
  0x58   : > { %v321_v5 = vand.u32 2147483647, %v1337_v3  ;;  %v324_v6 = vand.u32 2139095040, %v1337_v3  ;;  %v217_v7 = vand.u32 2147483647, %v1339_v4  ;;  %v220_v8 = vand.u32 2139095040, %v1339_v4 }
  0x59   : > { %v1162_v35 = vmov 920167782   ;;  %v1163_v43 = vmov 1326507024   ;;  %vm323_vm14 = vcmp.lt.s32.totalorder %v1337_v3, 0  ;;  %s932_s20 = sshll.u32 %s1206_s16, 8 }
  0x5a   : > { %v325_v9 = vshrl.u32 %v324_v6, 23  ;;  %v328_v10 = vand.u32 8388607, %v321_v5  ;;  %v221_v11 = vshrl.u32 %v220_v8, 23  ;;  %v224_v12 = vand.u32 8388607, %v217_v7  ;;  %s1419_s5 = scalar_lea.hbm %s1464_s2, %s932_s20 }
  0x5b   : > { %vm322_vm15 = vcmp.le.f32.partialorder %v321_v5, 0.7853982  ;;  %s801_s4 = sshll.u32 %s202_s18, 4  ;;  %s784_s8 = scalar_lea.sflag [#allocation4], %s1321_s30  ;;  %s802_s4 = int_to_ptr.vmem [resolvable:$true] %s801_s4 }
  0x5c   : > { %v918_v13 = vadd.s32 4294967169, %v325_v9  ;;  %v914_v14 = vadd.s32 4294967169, %v221_v11  ;;  %v329_v16 = vor.u32 8388608, %v328_v10  ;;  %v225_v17 = vor.u32 8388608, %v224_v12  ;;  %s1081_s9 = scalar_lea.vmem %s802_s4, 256  ;;  %s1164_s10 = smov [#allocation7]  }
  0x5d   : > { %p1082_p4 = scmp.ne.s32.totalorder %s802_s4, %s1081_s9  ;;  %s1085_s11 = sshll.u32 %s1164_s10, 4  ;;  %s1086_s11 = int_to_ptr.vmem [resolvable:$false] %s1085_s11 }
  0x5e   : > { %v331_v15 = vadd.s32 1, %v918_v13  ;;  %v227_v18 = vadd.s32 1, %v914_v14  ;;  %v1349_v23 = vshll.u32 %v329_v16, 8  ;;  %v1351_v25 = vshll.u32 %v225_v17, 8  ;;  %s1087_s27 = scalar_lea.vmem %s1086_s11, 512  ;;  %p1088_p10 = scmp.lt.s32.totalorder %s802_s4, %s1086_s11 }
  0x5f   : > { %p1083_p6 = pnand %p1082_p4, %p1276_p12  ;;  %p1089_p13 = scmp.lt.s32.totalorder %s1087_s27, %s1081_s9 }
  0x60   : > { %vm332_vm0 = vcmp.gt.s32.totalorder %v331_v15, 0  ;;  %vm228_vm1 = vcmp.gt.s32.totalorder %v227_v18, 0 }
  0x61   : > { %v333_v19 = vsel %vm332_vm0, %v331_v15, 0  ;;  %v229_v22 = vsel %vm228_vm1, %v227_v18, 0  ;;  %vm219_vm0 = vcmp.lt.s32.totalorder %v1339_v4, 0  ;;  %vm218_vm1 = vcmp.le.f32.partialorder %v217_v7, 0.7853982  ;;  %p1084_p8 = pneg %p1083_p6  ;;  %p1090_p3 = por %p1089_p13, %p1088_p10 }
  0x62   : > { %v334_v20 = vshrl.u32 %v333_v19, 5  ;;  %v335_v21 = vand.u32 31, %v333_v19  ;;  %v231_v24 = vand.u32 31, %v229_v22  ;;  %v1353_v37 = vshrl.u32 %v229_v22, 5 }
  0x63   : > { %p1091_p7 = pnand %p1090_p3, %p1084_p8 }
  0x64   : > { %v336_v26 = vsub.s32 32, %v335_v21  ;;  %v338_v28 = vshll.u32 %v1158_v27, %v335_v21  ;;  %v341_v30 = vshll.u32 %v1159_v29, %v335_v21  ;;  %v344_v32 = vshll.u32 %v1160_v31, %v335_v21 }
  0x65   : > { %v347_v34 = vshll.u32 %v1161_v33, %v335_v21  ;;  %v350_v36 = vshll.u32 %v1162_v35, %v335_v21  ;;  %vm353_vm2 = vcmp.lt.s32.totalorder %v334_v20, 1  ;;  %vm354_vm3 = vcmp.lt.s32.totalorder %v334_v20, 2 }
  0x66   : > { %v337_v38 = vshrl.u32 %v1158_v27, %v336_v26  ;;  %v339_v39 = vshrl.u32 %v1159_v29, %v336_v26  ;;  %v342_v40 = vshrl.u32 %v1160_v31, %v336_v26  ;;  %v345_v41 = vshrl.u32 %v1161_v33, %v336_v26 }
  0x67   : > { %v348_v42 = vshrl.u32 %v1162_v35, %v336_v26  ;;  %v351_v44 = vshrl.u32 %v1163_v43, %v336_v26  ;;  %vm356_vm4 = vcmp.lt.s32.totalorder %v334_v20, 4  ;;  %v232_v48 = vsub.s32 32, %v231_v24 }
  0x68   : > { %v340_v45 = vor.u32 %v339_v39, %v338_v28  ;;  %v343_v46 = vor.u32 %v342_v40, %v341_v30  ;;  %v346_v47 = vor.u32 %v345_v41, %v344_v32  ;;  %vm355_vm5 = vcmp.lt.s32.totalorder %v334_v20, 3 }
  0x69   : > { %v349_v49 = vor.u32 %v348_v42, %v347_v34  ;;  %v352_v50 = vor.u32 %v351_v44, %v350_v36  ;;  %v234_v51 = vshll.u32 %v1158_v27, %v231_v24  ;;  %v237_v59 = vshll.u32 %v1159_v29, %v231_v24 }
  0x6a   : > { %v357_v52 = vsel %vm353_vm2, %v337_v38, %v340_v45  ;;  %v358_v53 = vsel %vm356_vm4, %v346_v47, 2102212464  ;;  %v361_v54 = vsel %vm353_vm2, %v340_v45, %v343_v46  ;;  %v365_v55 = vsel %vm353_vm2, %v343_v46, %v346_v47 }
  0x6b   : > { %v359_v56 = vsel %vm355_vm5, %v343_v46, %v358_v53  ;;  %v362_v57 = vsel %vm356_vm4, %v349_v49, 920167782  ;;  %v366_v58 = vsel %vm356_vm4, %v352_v50, 1326507024  ;;  %v233_v62 = vshrl.u32 %v1158_v27, %v232_v48 }
  0x6c   : > { %v363_v60 = vsel %vm355_vm5, %v346_v47, %v362_v57  ;;  %v367_v61 = vsel %vm355_vm5, %v349_v49, %v366_v58  ;;  %v235_v63 = vshrl.u32 %v1159_v29, %v232_v48  ;;  %v360_v1 = vsel %vm354_vm3, %v357_v52, %v359_v56 }
  0x6d   : > { %v364_v2 = vsel %vm354_vm3, %v361_v54, %v363_v60  ;;  %v368_v6 = vsel %vm354_vm3, %v365_v55, %v367_v61  ;;  %v238_v8 = vshrl.u32 %v1160_v31, %v232_v48  ;;  %v240_v15 = vshll.u32 %v1160_v31, %v231_v24 }
  0x6e   : > { %v1362_v9 = vmul.u32.u64.low %v1349_v23, %v368_v6  ;;  %v1363_v10 = vmul.u32.u64.high %v1349_v23, %v368_v6, %v1362_v9  ;;  %v1366_v11 = vmul.u32.u64.low %v1349_v23, %v364_v2  ;;  %v1367_v12 = vmul.u32.u64.high %v1349_v23, %v364_v2, %v1366_v11 }
  0x6f   : > { %v236_v13 = vor.u32 %v235_v63, %v234_v51  ;;  %v239_v14 = vor.u32 %v238_v8, %v237_v59  ;;  %v241_v16 = vshrl.u32 %v1161_v33, %v232_v48  ;;  %v243_v17 = vshll.u32 %v1161_v33, %v231_v24 }
  0x70   : > { %v244_v18 = vshrl.u32 %v1162_v35, %v232_v48  ;;  %v246_v19 = vshll.u32 %v1162_v35, %v231_v24  ;;  %v247_v21 = vshrl.u32 %v1163_v43, %v232_v48  ;;  %v376_v20 = vmul.u32 %v1349_v23, %v360_v1 }
  0x71   : > { %v242_v22 = vor.u32 %v241_v16, %v240_v15  ;;  %vm249_vm6 = vcmp.lt.s32.totalorder %v1353_v37, 1  ;;  %vm250_vm7 = vcmp.lt.s32.totalorder %v1353_v37, 2  ;;  %vm378_vm8 = vc.u32 %v1363_v10, %v1366_v11 }
  0x72   : > { %v379_v26 = vadd.s32 1, %v1367_v12  ;;  %v245_v27 = vor.u32 %v244_v18, %v243_v17  ;;  %vm251_vm9 = vcmp.lt.s32.totalorder %v1353_v37, 3  ;;  %v248_v28 = vor.u32 %v247_v21, %v246_v19 }
  0x73   : > { %vm252_vm10 = vcmp.lt.s32.totalorder %v1353_v37, 4  ;;  %v253_v29 = vsel %vm249_vm6, %v233_v62, %v236_v13  ;;  %v257_v24 = vsel %vm249_vm6, %v236_v13, %v239_v14  ;;  %v261_v32 = vsel %vm249_vm6, %v239_v14, %v242_v22 }
  0x74   : > { %v380_v30 = vsel %vm378_vm8, %v379_v26, %v1367_v12  ;;  %v254_v23 = vsel %vm252_vm10, %v242_v22, 2102212464  ;;  %v258_v31 = vsel %vm252_vm10, %v245_v27, 920167782  ;;  %v262_v36 = vsel %vm252_vm10, %v248_v28, 1326507024 }
  0x75   : > { %v381_v33 = vadd.s32 %v380_v30, %v376_v20  ;;  %v255_v34 = vsel %vm251_vm9, %v239_v14, %v254_v23  ;;  %v259_v35 = vsel %vm251_vm9, %v242_v22, %v258_v31  ;;  %v263_v40 = vsel %vm251_vm9, %v245_v27, %v262_v36 }
  0x76   : > { %v256_v38 = vsel %vm250_vm7, %v253_v29, %v255_v34  ;;  %v260_v39 = vsel %vm250_vm7, %v257_v24, %v259_v35  ;;  %v264_v42 = vsel %vm250_vm7, %v261_v32, %v263_v40  ;;  %v377_v61 = vadd.s32 %v1366_v11, %v1363_v10 }
  0x77   : > { %v382_v41 = vadd.s32 536870912, %v381_v33  ;;  %v1384_v43 = vmul.u32.u64.low %v1351_v25, %v260_v39  ;;  %v1385_v44 = vmul.u32.u64.high %v1351_v25, %v260_v39, %v1384_v43  ;;  %v272_v48 = vmul.u32 %v1351_v25, %v256_v38 }
  0x78   : > { %v1388_v45 = vmul.u32.u64.low %v1351_v25, %v264_v42  ;;  %v1389_v46 = vmul.u32.u64.high %v1351_v25, %v264_v42, %v1388_v45  ;;  %vm413_vm5 = vweird.f32 %v1337_v3  ;;  %vm309_vm9 = vweird.f32 %v1339_v4 }
  0x79   : > { %v383_v47 = vshrl.u32 %v382_v41, 30  ;;  %v275_v50 = vadd.s32 1, %v1385_v44  ;;  %vm444_vm10 = vcmask 64512  }
  0x7a   : > { %vm274_vm11 = vc.u32 %v1389_v46, %v1384_v43  ;;  %v273_v18 = vadd.s32 %v1384_v43, %v1389_v46 }
  0x7b   : > { %v384_v49 = vshll.u32 %v383_v47, 30  ;;  %v276_v37 = vsel %vm274_vm11, %v275_v50, %v1385_v44  ;;  %v407_v10 = vsub.s32 4, %v383_v47  ;;  %vm768_vm11 = vcmask 7168  }
  0x7c   : > { %v277_v52 = vadd.s32 %v276_v37, %v272_v48 }
  0x7d   : > { %v385_v51 = vsub.s32 %v381_v33, %v384_v49  ;;  %v408_v24 = vsel %vm323_vm14, %v407_v10, %v383_v47 }
  0x7e   : > { %v278_v54 = vadd.s32 536870912, %v277_v52  ;;  %v410_v33 = vsel %vm322_vm15, 0, %v408_v24  ;;  %v598_v24 = vld [vmem:[#allocation5 + $0x10] sm:$0xff] }
  0x7f   : > { %v387_v53 = vsub.s32 0, %v385_v51  ;;  %v414_v39 = vadd.s32 3, %v410_v33 }
  0x80   : > { %v279_v56 = vshrl.u32 %v278_v54, 30 }
  0x81   : > { %v919_v55 = vmin.u32 %v387_v53, %v385_v51  ;;  %v415_v42 = vand.u32 3, %v414_v39 }
  0x82   : > { %v280_v58 = vshll.u32 %v279_v56, 30  ;;  %v303_v38 = vsub.s32 4, %v279_v56 }
  0x83   : > { %v389_v57 = vclz %v919_v55  ;;  %vm420_vm2 = vcmp.eq.s32.totalorder %v415_v42, 2  ;;  %vm417_vm3 = vcmp.eq.s32.totalorder %v415_v42, 0  ;;  %vm416_vm4 = vcmp.lt.s32.totalorder %v415_v42, 2 }
  0x84   : > { %v281_v60 = vsub.s32 %v277_v52, %v280_v58  ;;  %v304_v41 = vsel %vm219_vm0, %v303_v38, %v279_v56 }
  0x85   : > { %v920_v59 = vadd.s32 4294967294, %v389_v57  ;;  %v306_v45 = vsel %vm218_vm1, 0, %v304_v41 }
  0x86   : > { %v283_v62 = vsub.s32 0, %v281_v60  ;;  %v310_v49 = vadd.s32 3, %v306_v45 }
  0x87   : > { %vm921_vm12 = vcmp.lt.s32.totalorder %v920_v59, 0 }
  0x88   : > { %v392_v25 = vsel %vm921_vm12, 0, %v920_v59  ;;  %v915_v6 = vmin.u32 %v283_v62, %v281_v60  ;;  %v311_v52 = vand.u32 3, %v310_v49 }
  0x89   : > { %v393_v63 = vsub.s32 32, %v392_v25  ;;  %v394_v1 = vshll.u32 %v385_v51, %v392_v25  ;;  %v397_v2 = vsub.s32 4294967266, %v392_v25 }
  0x8a   : > { %v285_v12 = vclz %v915_v6  ;;  %vm316_vm6 = vcmp.eq.s32.totalorder %v311_v52, 2  ;;  %vm313_vm7 = vcmp.eq.s32.totalorder %v311_v52, 0  ;;  %vm312_vm8 = vcmp.lt.s32.totalorder %v311_v52, 2 }
  0x8b   : > { %v395_v8 = vshrl.u32 %v377_v61, %v393_v63  ;;  %v398_v9 = vadd.s32 127, %v397_v2 }
  0x8c   : > { %v916_v15 = vadd.s32 4294967294, %v285_v12 }
  0x8d   : > { %v396_v13 = vor.u32 %v395_v8, %v394_v1  ;;  %v399_v14 = vshll.u32 %v398_v9, 23 }
  0x8e   : > { %vm917_vm13 = vcmp.lt.s32.totalorder %v916_v15, 0 }
  0x8f   : > { %v400_v16 = vor.u32 4788187, %v399_v14  ;;  %v403_v17 = vcvt.s32.f32 %v396_v13  ;;  %v288_v11 = vsel %vm917_vm13, 0, %v916_v15 }
  0x90   : > { %v289_v21 = vsub.s32 32, %v288_v11  ;;  %v290_v20 = vshll.u32 %v281_v60, %v288_v11  ;;  %v293_v22 = vsub.s32 4294967266, %v288_v11 }
  0x91   : > { %v401_v19 = vand.u32 2147483647, %v400_v16 }
  0x92   : > { %v291_v27 = vshrl.u32 %v273_v18, %v289_v21  ;;  %v294_v28 = vadd.s32 127, %v293_v22  ;;  %v441_v21 = vld [vmem:[#allocation5 + $0x8] sm:$0xff] }
  0x93   : > { %v404_v26 = vmul.f32 %v403_v17, %v401_v19 }
  0x94   : > { %v292_v30 = vor.u32 %v291_v27, %v290_v20  ;;  %v295_v23 = vshll.u32 %v294_v28, 23 }
  0x95   : > { %v405_v29 = vxor.u32 2147483648, %v404_v26 }
  0x96   : > { %v296_v34 = vor.u32 4788187, %v295_v23  ;;  %v299_v35 = vcvt.s32.f32 %v292_v30 }
  0x97   : > { %v406_v31 = vsel %vm323_vm14, %v405_v29, %v404_v26 }
  0x98   : > { %v409_v32 = vsel %vm322_vm15, %v1337_v3, %v406_v31  ;;  %v297_v36 = vand.u32 2147483647, %v296_v34  ;;  %v431_v31 = vld [vmem:[#allocation5] sm:$0xff] }
  0x99   : > { %1015 = vcosq.f32 %v409_v32 }
  0x9a   : > { %1017 = vsinq.f32 %v409_v32  ;;  %v300_v40 = vmul.f32 %v299_v35, %v297_v36  ;;  %v682_v32 = vld [vmem:[#allocation5 + $0x18] sm:$0xff] }
  0x9c   : > { %v301_v5 = vxor.u32 2147483648, %v300_v40 }
  0x9e   : > { %v302_v43 = vsel %vm219_vm0, %v301_v5, %v300_v40 }
  0x9f   : > { %v305_v44 = vsel %vm218_vm1, %v1339_v4, %v302_v43 }
  0xa0   : > { %1019 = vcosq.f32 %v305_v44 }
  0xa1   : > { %1021 = vsinq.f32 %v305_v44 }
  0xa3   : > { %v1016_v46 = vpop.eup %1015 }
  0xa4   : > { %v1018_v47 = vpop.eup %1017  ;;  %v421_v48 = vxor.u32 2147483648, %v1016_v46 }
  0xa5   : > { %v418_v50 = vxor.u32 2147483648, %v1018_v47 }
  0xa6   : > { %v422_v7 = vsel %vm420_vm2, %v421_v48, %v1018_v47 }
  0xa7   : > { %v419_v51 = vsel %vm417_vm3, %v1016_v46, %v418_v50 }
  0xa8   : > { %v423_v37 = vsel %vm416_vm4, %v419_v51, %v422_v7 }
  0xa9   : > { %v424_v53 = vsel %vm413_vm5, nan, %v423_v37 }
  0xaa   : > { %v426_v54 = vmul.f32 %v424_v53, %v424_v53  ;;  %v1020_v55 = vpop.eup %1019  ;;  %v435_v60 = vsub.f32 0.0, %v424_v53  ;;  %v433_v4 = vmul.f32 0.63661975, %v424_v53 }
  0xab   : > { %v1022_v57 = vpop.eup %1021  ;;  %v317_v58 = vxor.u32 2147483648, %v1020_v55 }
  0xac   : > { %v428_v56 = vmul.f32 4.0, %v426_v54  ;;  %v314_v61 = vxor.u32 2147483648, %v1022_v57 }
  0xad   : > { %v318_v25 = vsel %vm316_vm6, %v317_v58, %v1022_v57 }
  0xae   : > { %v430_v59 = vsub.f32 2.0, %v428_v56  ;;  %v315_v62 = vsel %vm313_vm7, %v1020_v55, %v314_v61 }
  0xaf   : > { %v319_v63 = vsel %vm312_vm8, %v315_v62, %v318_v25 }
  0xb0   : > { %v437_v3 = vmul.f32 %v430_v59, %v424_v53  ;;  %v320_v2 = vsel %vm309_vm9, nan, %v319_v63 }
  0xb1   : > { %v425_v6 = vmul.f32 %v320_v2, %v320_v2  ;;  %v434_v15 = vsub.f32 0.0, %v320_v2  ;;  %v432_v22 = vmul.f32 0.63661975, %v320_v2 }
  0xb2   : > { %v439_v1 = vsub.f32 %v437_v3, %v435_v60 }
  0xb3   : > { %v427_v12 = vmul.f32 4.0, %v425_v6 }
  0xb4   : > { %v443_v8 = vmul.f32 0.21220659, %v439_v1  ;;  %v594_v9 = vmul.f32 %v439_v1, %v430_v59 }
  0xb5   : > { %v429_v14 = vsub.f32 2.0, %v427_v12 }
  0xb6   : > { %448 = vmatprep.subr.mxu1 %v443_v8  ;;  %v596_v13 = vsub.f32 %v594_v9, %v424_v53 }
  0xb7   : > { %v436_v18 = vmul.f32 %v429_v14, %v320_v2 }
  0xb8   : > { %v600_v16 = vmul.f32 0.12732396, %v596_v13  ;;  %v678_v17 = vmul.f32 %v596_v13, %v430_v59 }
  0xb9   : > { %v438_v19 = vsub.f32 %v436_v18, %v434_v15 }
  0xba   : > { %604 = vmatprep.subr.mxu0 %v600_v16  ;;  %v680_v10 = vsub.f32 %v678_v17, %v439_v1 }
  0xbb   : > { %v442_v11 = vmul.f32 0.21220659, %v438_v19  ;;  %v593_v20 = vmul.f32 %v438_v19, %v429_v14 }
  0xbc   : > { %v684_v27 = vmul.f32 0.09094568, %v680_v10 }
  0xbd   : > { %449 = vmatpush1.msra.mxu1 %v442_v11  ;;  %v595_v26 = vsub.f32 %v593_v20, %v320_v2 }
  0xbe   : > { %922 = vmatmul.mubr.msk.f32.vlgmr.msra.gmra.mrb[0].mxu1 %vm444_vm10, %v441_v21  ;;  %522 = vmatprep.subr.mxu1 %v433_v4 }
  0xbf   : > { %v599_v28 = vmul.f32 0.12732396, %v595_v26  ;;  %v677_v29 = vmul.f32 %v595_v26, %v429_v14  ;;  %523 = vmatpush1.msra.mxu1 %v432_v22  ;;  %586 = vmatprep.mubr.f32.mxu1 %v1157_v0 }
  0xc1   : > { %605 = vmatpush1.msra.mxu0 %v599_v28  ;;  %v679_v30 = vsub.f32 %v677_v29, %v438_v19 }
  0xc2   : > { %924 = vmatmul.mubr.msk.f32.vlgmr.msra.gmra.mrb[0].mxu0 %vm444_vm10, %v598_v24  ;;  %688 = vmatprep.subr.mxu0 %v684_v27 }
  0xc3   : > { %v683_v23 = vmul.f32 0.09094568, %v679_v30  ;;  %752 = vmatprep.mubr.f32.mxu0 %v1157_v0 }
  0xc5   : > { %689 = vmatpush1.msra.mxu0 %v683_v23 }
  0xc6   : > { %923 = vmatmul.mubr.msk.f32.vlgmr.msra.gmra.mrb[0].mxu1 %vm444_vm10, %v431_v31 }
  0xca   : > { %925 = vmatmul.mubr.msk.f32.vlgmr.msra.gmra.mrb[0].mxu0 %vm444_vm10, %v682_v32 }
 0x199   : > { %v588_v33 = vpop.f32.mrb[0].mxu1 }
 0x19a   : > { %v590_v34 = vpop.f32.mrb[1].mxu1 }
 0x19d   : > { %v754_v35 = vpop.f32.mrb[0].mxu0 }
 0x19e   : > { %v933_v36 = vadd.f32 %v754_v35, %v588_v33  ;;  %v756_v38 = vpop.f32.mrb[1].mxu0 }
 0x19f   : > { %v934_v39 = vadd.f32 %v756_v38, %v590_v34 }
 0x1a0   : > { %761 = vst [vmem:[%s202_s18] sm:$0xff] %v933_v36  ;;  %v763_v40 = vmul.f32 %v933_v36, %v933_v36 }
 0x1a1   : > { %762 = vst [vmem:[%s202_s18 + $0x8] sm:$0xff] %v934_v39  ;;  %v764_v0 = vmul.f32 %v934_v39, %v934_v39 }
 0x1a3   : > { %v765_v5 = vadd.f32 %v764_v0, %v763_v40 }
 0x1a5   : > { %766 = vadd.xlane.f32.xlu0 %v765_v5 }
 0x232   : > { %v767_v41 = vpop.xlane.xlu0 %766 }
 0x233   : > { %v769_v42 = vsel %vm768_vm11, %v767_v41, 0.0 }
 0x234   : > { %770 = vadd.xlane.f32.xlu0 %v769_v42 }
 0x235   : > { %1094 = shalt.err (!%p1091_p7)
}
 0x236   : > { %s1095_s28 = scalar_lea.hbm %s1419_s5, 256  ;;  %s1099_s30 = scalar_lea.hbm %s1464_s2, 512 }
 0x237   : > { %p1096_p9 = scmp.ne.s32.totalorder %s1419_s5, %s1095_s28  ;;  %p1100_p0 = scmp.lt.u32.totalorder %s1419_s5, %s1464_s2 }
 0x238   : > { %p1101_p11 = scmp.lt.u32.totalorder %s1099_s30, %s1095_s28  ;;  %p1103_p4 = scmp.lt.u32.totalorder %s1095_s28, %s1419_s5 }
 0x239   : > { %p1097_p2 = pnand %p1096_p9, %p1276_p12 }
 0x23a   : > { %p1102_p1 = por %p1101_p11, %p1100_p0 }
 0x23b   : > { %p1098_p5 = pneg %p1097_p2 }
 0x23c   : > { %p1104_p6 = por %p1103_p4, %p1102_p1 }
 0x23e   : > { %p1105_p8 = pnand %p1104_p6, %p1098_p5 }
 0x240   : > { %1108 = shalt.err (!%p1105_p8)
}
 0x241   : > { %955 = dma.vmem_to_hbm [thread:$0]  (%p1276_p12), %s802_s4, 256, %s1419_s5, %s784_s8   ;;  %vm781_vm12 = vcmask 0  }
 0x242   : > { %p210_p10 = scmp.lt.s32.totalorder %s1206_s16, 1 }
 0x244   : > { %s1487_s16 = smov (!%p210_p10, %s1206_s16), 1 }
 0x245   : > { %s212_s25 = scalar_lea.vmem %s1465_s3, %s1487_s16 }
 0x2c1   : > { %v771_v43 = vpop.xlane.xlu0 %770 }
 0x2c2   : > { %v772_v44 = vrot.slane %v771_v43, 4 }
 0x2c4   : > { %v773_v45 = vadd.f32 %v772_v44, %v771_v43 }
 0x2c6   : > { %v774_v46 = vrot.slane %v773_v45, 2 }
 0x2c8   : > { %v775_v47 = vadd.f32 %v774_v46, %v773_v45 }
 0x2ca   : > { %v776_v48 = vrot.slane %v775_v47, 1 }
 0x2cc   : > { %v777_v49 = vadd.f32 %v776_v48, %v775_v47 }
 0x2ce   : > { %947 = vpush %v777_v49 }
 0x2ff   : > { %s948_s7 = spop %947 }
 0x300   : > { %s779_s21 = smul.f32 0.0033333334, %s948_s7 }
 0x302   : > { %v780_v50 = vstv %s779_s21 }
 0x303   : > { %782 = vst.msk [vmem:[%s212_s25] sm:$0x1] %vm781_vm12, %v780_v50 }
 0x304 PF: > { %s816_s4 = sand.u32 1, %s1139_s12   ;;  %p1480_p12 = scmp.ne.s32.totalorder %s1470_s19, 0 }
 0x305   : > { %p1481_p13 = scmp.ge.s32.totalorder %s1151_s15, 2  ;;  %s817_s26 = scalar_lea.sflag [#allocation4], %s816_s4 }
 0x307   : > { %p966_p3 = pnand %p1481_p13, %p1480_p12 }
 0x309   : > { %1134 = dma.done.wait (!%p966_p3), %s817_s26, 256  }
 0x30a   : > { %1136 = vsyncadd (!%p966_p3), %s817_s26, 4294967040  ;;  %p18_p7 = scmp.ge.s32.totalorder %s1241_s24, 4   ;;  %s1482_s12 = smov %s1143_s13 }
 0x30b   : > { %s1483_s13 = smov %s1147_s14  ;;  %s1484_s14 = smov %s1272_s17 }
 0x30c   : > { %s1485_s15 = smov %s1241_s24  ;;  %20 = sbr.rel (!%p18_p7) target bundleno = 6 (0x6), region = 92 }
 0x313   :  { %828 = vsyncpa [#allocation3], 1 }
 0x314   :  { %830 = vsyncpa [#allocation3 + $0x1], 1 }
 0x315   :  { %831 = vsyncpa [#allocation6], 1 }
 0x316   :  { %832 = vsyncpa [#allocation4], 1 }
 0x317   :  { %834 = vsyncpa [#allocation4 + $0x1], 1 }

</bundles_post_ra>
